<compile_context>
chip_gen: v6e
topology: v6e:2x2x1
jax: 0.10.0
libtpu: 0.0.40
codegen_flags: <defaults>
</compile_context>

<pallas_src>
import functools

import jax
import jax.numpy as jnp
from jax.experimental import pallas as pl
from jax.experimental.pallas import tpu as pltpu


# ----------------------------------------------------------------------------
# Fused kernel: base features + MetaNet coefs + task-vector composition
# ----------------------------------------------------------------------------
def _fused_kernel(x_ref, wenc_ref, dw_ref, benc_ref, w1_ref, b1_ref,
                  w2_ref, b2_ref, db_ref, out_ref, feat_acc, proj_acc,
                  *, num_tv, feat_dim, compute_dtype):
    k = pl.program_id(1)                      # D-tile index (reduction axis)

    @pl.when(k == 0)
    def _init():
        feat_acc[...] = jnp.zeros_like(feat_acc)
        proj_acc[...] = jnp.zeros_like(proj_acc)

    # Stream the D contraction: two MXU matmuls per tile, f32 accumulation.
    x_blk = x_ref[...].astype(compute_dtype)                      # [tb, td]
    feat_acc[...] += jnp.dot(x_blk, wenc_ref[...].astype(compute_dtype),
                             preferred_element_type=jnp.float32)  # [tb, F]
    proj_acc[...] += jnp.dot(x_blk, dw_ref[...].astype(compute_dtype),
                             preferred_element_type=jnp.float32)  # [tb, T*F]

    @pl.when(k == pl.num_programs(1) - 1)
    def _finalize():
        # Frozen-encoder features (also the base term of the output).
        feat = feat_acc[...] + benc_ref[...]                      # [tb, F]

        # MetaNet: Linear -> ReLU -> Linear  (tiny, stays in f32).
        hid = jnp.dot(feat, w1_ref[...],
                      preferred_element_type=jnp.float32) + b1_ref[...]
        hid = jnp.maximum(hid, 0.0)
        coefs = jnp.dot(hid, w2_ref[...],
                        preferred_element_type=jnp.float32) + b2_ref[...]  # [tb, T]

        # out = feat + coefs @ dB + sum_t coefs[:, t] * (x @ dW_t)
        out = feat + jnp.dot(coefs, db_ref[...],
                             preferred_element_type=jnp.float32)
        proj = proj_acc[...]                                      # [tb, T*F]
        for t in range(num_tv):                                   # small static unroll
            out = out + coefs[:, t:t + 1] * proj[:, t * feat_dim:(t + 1) * feat_dim]

        out_ref[...] = out.astype(out_ref.dtype)                  # single lane-dense store


# ----------------------------------------------------------------------------
# Wrapper
# ----------------------------------------------------------------------------
def metanet_image_encoder(x, params, *, compute_dtype=jnp.bfloat16):
    """Pallas implementation of MetaNetImageEncoder.forward (blockwise=False)."""
    wenc_t = params["wenc_t"].astype(jnp.float32)    # [D, F]
    benc = params["benc"].astype(jnp.float32)        # [1, F]
    w1_t = params["w1_t"].astype(jnp.float32)        # [F, HID]
    b1 = params["b1"].astype(jnp.float32)            # [1, HID]
    w2_t = params["w2_t"].astype(jnp.float32)        # [HID, T]
    b2 = params["b2"].astype(jnp.float32)            # [1, T]
    dwenc_t = params["dwenc_t"].astype(jnp.float32)  # [T, D, F]
    dbenc = params["dbenc"].astype(jnp.float32)      # [T, 1, F]

    bsz = x.shape[0]
    d, f = wenc_t.shape
    num_tv = dwenc_t.shape[0]
    tf = num_tv * f

    x_flat = x.reshape(bsz, d).astype(jnp.float32)

    # Lane-dense layouts for the task vectors: [D, T*F] weights, [T, F] biases.
    dw_flat = jnp.transpose(dwenc_t, (1, 0, 2)).reshape(d, tf)
    db_flat = dbenc.reshape(num_tv, f)

    # Tile the contraction axis D (inner, "arbitrary" grid axis).
    tile_d = d
    for cand in (512, 256, 128):
        if d % cand == 0:
            tile_d = cand
            break
    tile_b = bsz                      # single batch block at these small sizes
    grid = (bsz // tile_b, d // tile_d)

    kernel = functools.partial(_fused_kernel, num_tv=num_tv, feat_dim=f,
                               compute_dtype=compute_dtype)

    out = pl.pallas_call(
        kernel,
        out_shape=jax.ShapeDtypeStruct((bsz, f), jnp.float32),
        grid_spec=pltpu.PrefetchScalarGridSpec(
            num_scalar_prefetch=0,
            grid=grid,
            in_specs=[
                pl.BlockSpec((tile_b, tile_d), lambda b, k: (b, k)),   # x_flat
                pl.BlockSpec((tile_d, f), lambda b, k: (k, 0)),        # wenc_t
                pl.BlockSpec((tile_d, tf), lambda b, k: (k, 0)),       # dw_flat
                pl.BlockSpec((1, f), lambda b, k: (0, 0)),             # benc
                pl.BlockSpec(w1_t.shape, lambda b, k: (0, 0)),         # w1_t
                pl.BlockSpec(b1.shape, lambda b, k: (0, 0)),           # b1
                pl.BlockSpec(w2_t.shape, lambda b, k: (0, 0)),         # w2_t
                pl.BlockSpec(b2.shape, lambda b, k: (0, 0)),           # b2
                pl.BlockSpec((num_tv, f), lambda b, k: (0, 0)),        # db_flat
            ],
            out_specs=pl.BlockSpec((tile_b, f), lambda b, k: (b, 0)),
            scratch_shapes=[
                pltpu.VMEM((tile_b, f), jnp.float32),    # feat accumulator
                pltpu.VMEM((tile_b, tf), jnp.float32),   # x @ dW accumulator
            ],
        ),
        compiler_params=pltpu.CompilerParams(
            dimension_semantics=("parallel", "arbitrary"),
            vmem_limit_bytes=32 * 1024 * 1024,
        ),
    )(x_flat, wenc_t, dw_flat, benc, w1_t, b1, w2_t, b2, db_flat)
    return out


# ----------------------------------------------------------------------------
# Pure-JAX reference (mirrors the PyTorch forward literally)
# ----------------------------------------------------------------------------
def reference_forward(x, params):
    wenc_t, benc = params["wenc_t"], params["benc"]
    w1_t, b1 = params["w1_t"], params["b1"]
    w2_t, b2 = params["w2_t"], params["b2"]
    dwenc_t, dbenc = params["dwenc_t"], params["dbenc"]
    bsz = x.shape[0]
    num_tv = dwenc_t.shape[0]

    x_flat = x.reshape(bsz, -1)
    feat = x_flat @ wenc_t + benc
    hid = jnp.maximum(feat @ w1_t + b1, 0.0)
    coefs = hid @ w2_t + b2

    outs = []
    for i in range(bsz):
        d_w = sum(coefs[i, t] * dwenc_t[t] for t in range(num_tv))
        d_b = sum(coefs[i, t] * dbenc[t] for t in range(num_tv))
        new_w = d_w + wenc_t
        new_b = d_b + benc
        outs.append(x_flat[i:i + 1] @ new_w + new_b)
    return jnp.concatenate(outs, axis=0)


if __name__ == "__main__":
    B, C, H, W = 2, 3, 16, 16
    D = C * H * W                 # 768 flattened image dim
    F = 64                        # synthetic base-encoder feature dim
    NUM_TV = 4                    # number of task vectors
    HID = max(F // 4, NUM_TV)     # MetaNet hidden dim (module default)

    key = jax.random.PRNGKey(0)
    keys = jax.random.split(key, 9)
    params = {
        "wenc_t":  0.02 * jax.random.normal(keys[0], (D, F), jnp.float32),
        "benc":    0.02 * jax.random.normal(keys[1], (1, F), jnp.float32),
        "w1_t":    0.01 * jax.random.normal(keys[2], (F, HID), jnp.float32),
        "b1":      0.01 * jax.random.normal(keys[3], (1, HID), jnp.float32),
        "w2_t":    0.05 * jax.random.normal(keys[4], (HID, NUM_TV), jnp.float32),
        "b2":      0.05 * jax.random.normal(keys[5], (1, NUM_TV), jnp.float32),
        "dwenc_t": 0.01 * jax.random.normal(keys[6], (NUM_TV, D, F), jnp.float32),
        "dbenc":   0.01 * jax.random.normal(keys[7], (NUM_TV, 1, F), jnp.float32),
    }
    x = jax.random.normal(keys[8], (B, C, H, W), jnp.float32)

    ref = reference_forward(x, params)

    # 1) f32 compute path: validates the fused/restructured formulation.
    run_f32 = jax.jit(functools.partial(metanet_image_encoder,
                                        compute_dtype=jnp.float32))
    out_f32 = jax.block_until_ready(run_f32(x, params))
    assert out_f32.shape == (B, F), out_f32.shape
    err_f32 = float(jnp.max(jnp.abs(out_f32 - ref)))
    assert jnp.allclose(out_f32, ref, atol=1e-2, rtol=1e-2), err_f32

    # 2) default bf16 MXU path (halved HBM/VMEM traffic for dwenc_t).
    out_bf16 = jax.block_until_ready(jax.jit(metanet_image_encoder)(x, params))
    assert out_bf16.shape == (B, F), out_bf16.shape
    err_bf16 = float(jnp.max(jnp.abs(out_bf16 - ref)))
    assert jnp.allclose(out_bf16, ref, atol=5e-2, rtol=5e-2), err_bf16

    print("KERNEL_OK")
</pallas_src>

<mosaic_0001>
module attributes {stable_mosaic.version = 11 : i64} {
  func.func @_fused_kernel(%arg0: i32, %arg1: i32, %arg2: memref<2x256xf32, #tpu.memory_space<vmem>>, %arg3: memref<256x64xf32, #tpu.memory_space<vmem>>, %arg4: memref<256x256xf32, #tpu.memory_space<vmem>>, %arg5: memref<1x64xf32, #tpu.memory_space<vmem>>, %arg6: memref<64x16xf32, #tpu.memory_space<vmem>>, %arg7: memref<1x16xf32, #tpu.memory_space<vmem>>, %arg8: memref<16x4xf32, #tpu.memory_space<vmem>>, %arg9: memref<1x4xf32, #tpu.memory_space<vmem>>, %arg10: memref<4x64xf32, #tpu.memory_space<vmem>>, %arg11: memref<2x64xf32, #tpu.memory_space<vmem>>, %arg12: memref<2x64xf32, #tpu.memory_space<vmem>>, %arg13: memref<2x256xf32, #tpu.memory_space<vmem>>) attributes {dimension_semantics = [#tpu.dimension_semantics<parallel>, #tpu.dimension_semantics<arbitrary>], iteration_bounds = array<i64: 1, 3>, scalar_prefetch = 0 : i64, scratch_operands = 2 : i64, tpu.core_type = #tpu.core_type<tc>, window_params = [{transform_indices = @transform_0, window_bounds = array<i64: 2, 256>}, {transform_indices = @transform_1, window_bounds = array<i64: 256, 64>}, {transform_indices = @transform_2, window_bounds = array<i64: 256, 256>}, {pipeline_mode = #tpu.pipeline_mode<synchronous>, transform_indices = @transform_3, window_bounds = array<i64: 1, 64>}, {pipeline_mode = #tpu.pipeline_mode<synchronous>, transform_indices = @transform_4, window_bounds = array<i64: 64, 16>}, {pipeline_mode = #tpu.pipeline_mode<synchronous>, transform_indices = @transform_5, window_bounds = array<i64: 1, 16>}, {pipeline_mode = #tpu.pipeline_mode<synchronous>, transform_indices = @transform_6, window_bounds = array<i64: 16, 4>}, {pipeline_mode = #tpu.pipeline_mode<synchronous>, transform_indices = @transform_7, window_bounds = array<i64: 1, 4>}, {pipeline_mode = #tpu.pipeline_mode<synchronous>, transform_indices = @transform_8, window_bounds = array<i64: 4, 64>}, {transform_indices = @transform_9, window_bounds = array<i64: 2, 64>}]} {
    %c0_i32 = arith.constant 0 : i32
    %0 = arith.cmpi eq, %arg1, %c0_i32 : i32
    %1 = arith.extui %0 : i1 to i32
    %c0_i32_0 = arith.constant 0 : i32
    %2 = arith.cmpi ne, %1, %c0_i32_0 : i32
    scf.if %2 {
      %cst_16 = arith.constant 0.000000e+00 : f32
      %17 = vector.broadcast %cst_16 : f32 to vector<2x64xf32>
      %c0_17 = arith.constant 0 : index
      %c0_18 = arith.constant 0 : index
      %18 = vector.load %arg12[%c0_17, %c0_18] : memref<2x64xf32, #tpu.memory_space<vmem>>, vector<2x64xf32>
      tpu.vector_store %arg12[%c0_17, %c0_18], %17 {strides = array<i32>} : memref<2x64xf32, #tpu.memory_space<vmem>>, vector<2x64xf32>,
      %cst_19 = arith.constant 0.000000e+00 : f32
      %19 = vector.broadcast %cst_19 : f32 to vector<2x256xf32>
      %c0_20 = arith.constant 0 : index
      %c0_21 = arith.constant 0 : index
      %20 = vector.load %arg13[%c0_20, %c0_21] : memref<2x256xf32, #tpu.memory_space<vmem>>, vector<2x256xf32>
      tpu.vector_store %arg13[%c0_20, %c0_21], %19 {strides = array<i32>} : memref<2x256xf32, #tpu.memory_space<vmem>>, vector<2x256xf32>,
    } else {
    }
    %c0 = arith.constant 0 : index
    %c0_1 = arith.constant 0 : index
    %3 = vector.load %arg2[%c0, %c0_1] : memref<2x256xf32, #tpu.memory_space<vmem>>, vector<2x256xf32>
    %c0_2 = arith.constant 0 : index
    %c0_3 = arith.constant 0 : index
    %4 = vector.load %arg12[%c0_2, %c0_3] : memref<2x64xf32, #tpu.memory_space<vmem>>, vector<2x64xf32>
    %c0_4 = arith.constant 0 : index
    %c0_5 = arith.constant 0 : index
    %5 = vector.load %arg3[%c0_4, %c0_5] : memref<256x64xf32, #tpu.memory_space<vmem>>, vector<256x64xf32>
    %cst = arith.constant dense<0.000000e+00> : vector<2x64xf32>
    %6 = tpu.matmul %3, %5, %cst {dimension_numbers = #tpu.dot_dimension_numbers<[1], [0], [0], [1], [0, 0, 1, 1], [], []>} : vector<2x256xf32>, vector<256x64xf32>, vector<2x64xf32> -> vector<2x64xf32>
    %7 = arith.addf %4, %6 : vector<2x64xf32>
    %c0_6 = arith.constant 0 : index
    %c0_7 = arith.constant 0 : index
    %8 = vector.load %arg12[%c0_6, %c0_7] : memref<2x64xf32, #tpu.memory_space<vmem>>, vector<2x64xf32>
    tpu.vector_store %arg12[%c0_6, %c0_7], %7 {strides = array<i32>} : memref<2x64xf32, #tpu.memory_space<vmem>>, vector<2x64xf32>,
    %c0_8 = arith.constant 0 : index
    %c0_9 = arith.constant 0 : index
    %9 = vector.load %arg13[%c0_8, %c0_9] : memref<2x256xf32, #tpu.memory_space<vmem>>, vector<2x256xf32>
    %c0_10 = arith.constant 0 : index
    %c0_11 = arith.constant 0 : index
    %10 = vector.load %arg4[%c0_10, %c0_11] : memref<256x256xf32, #tpu.memory_space<vmem>>, vector<256x256xf32>
    %cst_12 = arith.constant dense<0.000000e+00> : vector<2x256xf32>
    %11 = tpu.matmul %3, %10, %cst_12 {dimension_numbers = #tpu.dot_dimension_numbers<[1], [0], [0], [1], [0, 0, 1, 1], [], []>} : vector<2x256xf32>, vector<256x256xf32>, vector<2x256xf32> -> vector<2x256xf32>
    %12 = arith.addf %9, %11 : vector<2x256xf32>
    %c0_13 = arith.constant 0 : index
    %c0_14 = arith.constant 0 : index
    %13 = vector.load %arg13[%c0_13, %c0_14] : memref<2x256xf32, #tpu.memory_space<vmem>>, vector<2x256xf32>
    tpu.vector_store %arg13[%c0_13, %c0_14], %12 {strides = array<i32>} : memref<2x256xf32, #tpu.memory_space<vmem>>, vector<2x256xf32>,
    %c2_i32 = arith.constant 2 : i32
    %14 = arith.cmpi eq, %arg1, %c2_i32 : i32
    %15 = arith.extui %14 : i1 to i32
    %c0_i32_15 = arith.constant 0 : i32
    %16 = arith.cmpi ne, %15, %c0_i32_15 : i32
    scf.if %16 {
      %c0_16 = arith.constant 0 : index
      %c0_17 = arith.constant 0 : index
      %17 = vector.load %arg12[%c0_16, %c0_17] : memref<2x64xf32, #tpu.memory_space<vmem>>, vector<2x64xf32>
      %c0_18 = arith.constant 0 : index
      %c0_19 = arith.constant 0 : index
      %18 = vector.load %arg5[%c0_18, %c0_19] : memref<1x64xf32, #tpu.memory_space<vmem>>, vector<1x64xf32>
      %19 = vector.broadcast %18 : vector<1x64xf32> to vector<2x64xf32>
      %20 = arith.addf %17, %19 : vector<2x64xf32>
      %c0_20 = arith.constant 0 : index
      %c0_21 = arith.constant 0 : index
      %21 = vector.load %arg6[%c0_20, %c0_21] : memref<64x16xf32, #tpu.memory_space<vmem>>, vector<64x16xf32>
      %cst_22 = arith.constant dense<0.000000e+00> : vector<2x16xf32>
      %22 = tpu.matmul %20, %21, %cst_22 {dimension_numbers = #tpu.dot_dimension_numbers<[1], [0], [0], [1], [0, 0, 1, 1], [], []>} : vector<2x64xf32>, vector<64x16xf32>, vector<2x16xf32> -> vector<2x16xf32>
      %c0_23 = arith.constant 0 : index
      %c0_24 = arith.constant 0 : index
      %23 = vector.load %arg7[%c0_23, %c0_24] : memref<1x16xf32, #tpu.memory_space<vmem>>, vector<1x16xf32>
      %24 = vector.broadcast %23 : vector<1x16xf32> to vector<2x16xf32>
      %25 = arith.addf %22, %24 : vector<2x16xf32>
      %cst_25 = arith.constant 0.000000e+00 : f32
      %26 = vector.broadcast %cst_25 : f32 to vector<2x16xf32>
      %27 = arith.maximumf %25, %26 : vector<2x16xf32>
      %c0_26 = arith.constant 0 : index
      %c0_27 = arith.constant 0 : index
      %28 = vector.load %arg8[%c0_26, %c0_27] : memref<16x4xf32, #tpu.memory_space<vmem>>, vector<16x4xf32>
      %cst_28 = arith.constant dense<0.000000e+00> : vector<2x4xf32>
      %29 = tpu.matmul %27, %28, %cst_28 {dimension_numbers = #tpu.dot_dimension_numbers<[1], [0], [0], [1], [0, 0, 1, 1], [], []>} : vector<2x16xf32>, vector<16x4xf32>, vector<2x4xf32> -> vector<2x4xf32>
      %c0_29 = arith.constant 0 : index
      %c0_30 = arith.constant 0 : index
      %30 = vector.load %arg9[%c0_29, %c0_30] : memref<1x4xf32, #tpu.memory_space<vmem>>, vector<1x4xf32>
      %31 = vector.broadcast %30 : vector<1x4xf32> to vector<2x4xf32>
      %32 = arith.addf %29, %31 : vector<2x4xf32>
      %c0_31 = arith.constant 0 : index
      %c0_32 = arith.constant 0 : index
      %33 = vector.load %arg10[%c0_31, %c0_32] : memref<4x64xf32, #tpu.memory_space<vmem>>, vector<4x64xf32>
      %cst_33 = arith.constant dense<0.000000e+00> : vector<2x64xf32>
      %34 = tpu.matmul %32, %33, %cst_33 {dimension_numbers = #tpu.dot_dimension_numbers<[1], [0], [0], [1], [0, 0, 1, 1], [], []>} : vector<2x4xf32>, vector<4x64xf32>, vector<2x64xf32> -> vector<2x64xf32>
      %35 = arith.addf %20, %34 : vector<2x64xf32>
      %c0_34 = arith.constant 0 : index
      %c0_35 = arith.constant 0 : index
      %36 = vector.load %arg13[%c0_34, %c0_35] : memref<2x256xf32, #tpu.memory_space<vmem>>, vector<2x256xf32>
      %37 = vector.extract_strided_slice %32 {offsets = [0, 0], sizes = [2, 1], strides = [1, 1]} : vector<2x4xf32> to vector<2x1xf32>
      %38 = vector.extract_strided_slice %36 {offsets = [0, 0], sizes = [2, 64], strides = [1, 1]} : vector<2x256xf32> to vector<2x64xf32>
      %39 = vector.broadcast %37 : vector<2x1xf32> to vector<2x64xf32>
      %40 = arith.mulf %39, %38 : vector<2x64xf32>
      %41 = arith.addf %35, %40 : vector<2x64xf32>
      %42 = vector.extract_strided_slice %32 {offsets = [0, 1], sizes = [2, 1], strides = [1, 1]} : vector<2x4xf32> to vector<2x1xf32>
      %43 = vector.extract_strided_slice %36 {offsets = [0, 64], sizes = [2, 64], strides = [1, 1]} : vector<2x256xf32> to vector<2x64xf32>
      %44 = vector.broadcast %42 : vector<2x1xf32> to vector<2x64xf32>
      %45 = arith.mulf %44, %43 : vector<2x64xf32>
      %46 = arith.addf %41, %45 : vector<2x64xf32>
      %47 = vector.extract_strided_slice %32 {offsets = [0, 2], sizes = [2, 1], strides = [1, 1]} : vector<2x4xf32> to vector<2x1xf32>
      %48 = vector.extract_strided_slice %36 {offsets = [0, 128], sizes = [2, 64], strides = [1, 1]} : vector<2x256xf32> to vector<2x64xf32>
      %49 = vector.broadcast %47 : vector<2x1xf32> to vector<2x64xf32>
      %50 = arith.mulf %49, %48 : vector<2x64xf32>
      %51 = arith.addf %46, %50 : vector<2x64xf32>
      %52 = vector.extract_strided_slice %32 {offsets = [0, 3], sizes = [2, 1], strides = [1, 1]} : vector<2x4xf32> to vector<2x1xf32>
      %53 = vector.extract_strided_slice %36 {offsets = [0, 192], sizes = [2, 64], strides = [1, 1]} : vector<2x256xf32> to vector<2x64xf32>
      %54 = vector.broadcast %52 : vector<2x1xf32> to vector<2x64xf32>
      %55 = arith.mulf %54, %53 : vector<2x64xf32>
      %56 = arith.addf %51, %55 : vector<2x64xf32>
      %c0_36 = arith.constant 0 : index
      %c0_37 = arith.constant 0 : index
      %57 = vector.load %arg11[%c0_36, %c0_37] : memref<2x64xf32, #tpu.memory_space<vmem>>, vector<2x64xf32>
      tpu.vector_store %arg11[%c0_36, %c0_37], %56 {strides = array<i32>} : memref<2x64xf32, #tpu.memory_space<vmem>>, vector<2x64xf32>,
    } else {
    }
    return
  }
  func.func @transform_0(%arg0: i32, %arg1: i32) -> (i32, i32) {
    %c0_i32 = arith.constant 0 : i32
    return %arg0, %arg1 : i32, i32
  }
  func.func @transform_1(%arg0: i32, %arg1: i32) -> (i32, i32) {
    %c0_i32 = arith.constant 0 : i32
    %c0_i32_0 = arith.constant 0 : i32
    return %arg1, %c0_i32 : i32, i32
  }
  func.func @transform_2(%arg0: i32, %arg1: i32) -> (i32, i32) {
    %c0_i32 = arith.constant 0 : i32
    %c0_i32_0 = arith.constant 0 : i32
    return %arg1, %c0_i32 : i32, i32
  }
  func.func @transform_3(%arg0: i32, %arg1: i32) -> (i32, i32) {
    %c0_i32 = arith.constant 0 : i32
    %c0_i32_0 = arith.constant 0 : i32
    %c0_i32_1 = arith.constant 0 : i32
    return %c0_i32, %c0_i32_0 : i32, i32
  }
  func.func @transform_4(%arg0: i32, %arg1: i32) -> (i32, i32) {
    %c0_i32 = arith.constant 0 : i32
    %c0_i32_0 = arith.constant 0 : i32
    %c0_i32_1 = arith.constant 0 : i32
    return %c0_i32, %c0_i32_0 : i32, i32
  }
  func.func @transform_5(%arg0: i32, %arg1: i32) -> (i32, i32) {
    %c0_i32 = arith.constant 0 : i32
    %c0_i32_0 = arith.constant 0 : i32
    %c0_i32_1 = arith.constant 0 : i32
    return %c0_i32, %c0_i32_0 : i32, i32
  }
  func.func @transform_6(%arg0: i32, %arg1: i32) -> (i32, i32) {
    %c0_i32 = arith.constant 0 : i32
    %c0_i32_0 = arith.constant 0 : i32
    %c0_i32_1 = arith.constant 0 : i32
    return %c0_i32, %c0_i32_0 : i32, i32
  }
  func.func @transform_7(%arg0: i32, %arg1: i32) -> (i32, i32) {
    %c0_i32 = arith.constant 0 : i32
    %c0_i32_0 = arith.constant 0 : i32
    %c0_i32_1 = arith.constant 0 : i32
    return %c0_i32, %c0_i32_0 : i32, i32
  }
  func.func @transform_8(%arg0: i32, %arg1: i32) -> (i32, i32) {
    %c0_i32 = arith.constant 0 : i32
    %c0_i32_0 = arith.constant 0 : i32
    %c0_i32_1 = arith.constant 0 : i32
    return %c0_i32, %c0_i32_0 : i32, i32
  }
  func.func @transform_9(%arg0: i32, %arg1: i32) -> (i32, i32) {
    %c0_i32 = arith.constant 0 : i32
    %c0_i32_0 = arith.constant 0 : i32
    return %arg0, %c0_i32 : i32, i32
  }
}

</mosaic_0001>

<bundles_post_ra>
// kernel: metanet_image_encoder.1
= control target key start
LH: loop header
LB: loop body
LE: loop exit
PB: predicated region body
PF: predicated region fallthrough
CT: control target
= control target key end

     0   :  { %14 = vsyncpa [#allocation5], 0  ;;  %s1333_s30 = smov 0   ;;  %s1335_s10 = smov 0   ;;  %s1553_s0 = inlined_call_operand.vmem [shape: f32[2,768], index: 0, kind: input, shape index: {}]   ;;  %s1554_s1 = inlined_call_operand.vmem [shape: f32[768,64], index: 1, kind: input, shape index: {}]   ;;  %s1555_s2 = inlined_call_operand.vmem [shape: f32[768,256], index: 2, kind: input, shape index: {}]   ;;  %s1556_s3 = inlined_call_operand.vmem [shape: f32[1,64], index: 3, kind: input, shape index: {}]   ;;  %s1557_s4 = inlined_call_operand.vmem [shape: f32[64,16], index: 4, kind: input, shape index: {}]   ;;  %s1558_s5 = inlined_call_operand.vmem [shape: f32[1,16], index: 5, kind: input, shape index: {}]   ;;  %s1559_s6 = inlined_call_operand.vmem [shape: f32[16,4], index: 6, kind: input, shape index: {}]   ;;  %s1560_s7 = inlined_call_operand.vmem [shape: f32[1,4], index: 7, kind: input, shape index: {}]   ;;  %s1561_s8 = inlined_call_operand.vmem [shape: f32[4,64], index: 8, kind: input, shape index: {}]   ;;  %s1562_s9 = inlined_call_operand.hbm [shape: f32[2,64], index: 9, kind: output, shape index: {}]  }
   0x1   :  { %s1337_s11 = smov 0  }
   0x2 LB: > { %s1070_s12 = sadd.s32 4294967295, %s1271_s11   ;;  %s29_s13 = sadd.s32 1, %s1267_s10  ;;  %s1271_s11 = sphi %s1337_s11, %s20_s11   ;;  %s1267_s10 = sphi %s1335_s10, %s1565_s10   ;;  %s1263_s30 = sphi %s1333_s30, %s1564_s30  }
   0x3   : > { %p30_p0 = scmp.ge.s32.totalorder %s29_s13, 3  ;;  %p1073_p1 = scmp.ge.s32.totalorder %s1271_s11, 1 }
   0x4   : > { %p330_p2 = scmp.lt.s32.totalorder %s1271_s11, 4 }
   0x5   : > { %s1567_s13 = smov (%p30_p0, %s29_s13), 0 }
   0x6   : > { %p331_p3 = pnand %p1073_p1, %p330_p2 }
   0x7   : > { %s1074_s14 = sshll.u32 (!%p331_p3), %s1263_s30, 1  ;;  %s1076_s15 = sshll.u32 (!%p331_p3), %s1263_s30, 5 }
   0x8   : > { %334 = sbr.rel (%p331_p3) target bundleno = 919 (0x397), region = 56  ;;  %p379_p4 = scmp.lt.s32.totalorder (!%p331_p3), %s1074_s14, 5 }
   0x9   : > { %p387_p5 = scmp.lt.s32.totalorder (!%p331_p3), %s1076_s15, 95  ;;  %p1081_p6 = scmp.ne.s32.totalorder (!%p331_p3), %s1263_s30, 0 }
   0xd   : > { %s1569_s14 = smov (!%p379_p4, %s1074_s14), 5  ;;  %s1571_s15 = smov (!%p387_p5, %s1076_s15), 95 }
   0xe   : > { %s1075_s16 = sshll.u32 %s1569_s14, 1  ;;  %s1077_s20 = sshll.u32 %s1571_s15, 3 }
   0xf   : > { %s1359_s19 = scalar_lea.vmem %s1553_s0, %s1075_s16  ;;  %s1364_s23 = scalar_lea.vmem %s1554_s1, %s1077_s20 }
  0x10   : > { %s1095_s24 = sshll.u32 %s1571_s15, 4  ;;  %402 = sbr.rel (%p1081_p6) target bundleno = 23 (0x17), region = 60 }
  0x11   : > { %s1369_s27 = scalar_lea.vmem %s1555_s2, %s1095_s24 }
  0x15   : > { %vm403_vm0 = vcmask 517120   ;;  %v1273_v0 = vmov 0.0  }
  0x16   : > { %404 = vst.msk [vmem:[#allocation2] sm:$0x3] %vm403_vm0, %v1273_v0  ;;  %405 = vst [vmem:[#allocation3] sm:$0xf] %v1273_v0 }
  0x17 PF: > { %v556_v1 = vld [vmem:[%s1369_s27 + $0xf8] sm:$0xff]  ;;  %v555_v2 = vld [vmem:[%s1369_s27 + $0xf0] sm:$0xff]  ;;  %v554_v3 = vld [vmem:[%s1369_s27 + $0xe8] sm:$0xff]  ;;  %vm522_vm1 = vcmask 517120   ;;  %p1083_p7 = scmp.ne.s32.totalorder %s1263_s30, 2 }
  0x18   : > { %589 = vmatprep.subr.mxu1 %v556_v1  ;;  %v553_v4 = vld [vmem:[%s1369_s27 + $0xe0] sm:$0xff]  ;;  %v552_v5 = vld [vmem:[%s1369_s27 + $0xd8] sm:$0xff]  ;;  %v551_v6 = vld [vmem:[%s1369_s27 + $0xd0] sm:$0xff]  ;;  %s1281_s22 = smov (!%p1083_p7), 64  }
  0x19   : > { %590 = vmatpush1.msra.mxu1 %v555_v2  ;;  %v550_v7 = vld [vmem:[%s1369_s27 + $0xc8] sm:$0xff]  ;;  %v549_v8 = vld [vmem:[%s1369_s27 + $0xc0] sm:$0xff]  ;;  %v548_v9 = vld [vmem:[%s1369_s27 + $0xb8] sm:$0xff] }
  0x1a   : > { %591 = vmatprep.subr.mxu1 %v554_v3  ;;  %v547_v10 = vld [vmem:[%s1369_s27 + $0xb0] sm:$0xff]  ;;  %v546_v11 = vld [vmem:[%s1369_s27 + $0xa8] sm:$0xff]  ;;  %v545_v12 = vld [vmem:[%s1369_s27 + $0xa0] sm:$0xff] }
  0x1b   : > { %592 = vmatpush1.msra.mxu1 %v553_v4  ;;  %v544_v13 = vld [vmem:[%s1369_s27 + $0x98] sm:$0xff]  ;;  %v543_v15 = vld [vmem:[%s1369_s27 + $0x90] sm:$0xff]  ;;  %v542_v17 = vld [vmem:[%s1369_s27 + $0x88] sm:$0xff] }
  0x1c   : > { %593 = vmatprep.subr.mxu1 %v552_v5  ;;  %v439_v14 = vld [vmem:[%s1364_s23 + $0xf8] sm:$0xff]  ;;  %v438_v18 = vld [vmem:[%s1364_s23 + $0xf0] sm:$0xff]  ;;  %v541_v20 = vld [vmem:[%s1369_s27 + $0x80] sm:$0xff] }
  0x1d   : > { %594 = vmatpush1.msra.mxu1 %v551_v6  ;;  %1096 = vmatprep.subr.mxu0 %v439_v14  ;;  %v423_v16 = vld [vmem:[%s1364_s23 + $0x78] sm:$0xff]  ;;  %v422_v19 = vld [vmem:[%s1364_s23 + $0x70] sm:$0xff]  ;;  %v437_v21 = vld [vmem:[%s1364_s23 + $0xe8] sm:$0xff] }
  0x1e   : > { %595 = vmatprep.subr.mxu1 %v550_v7  ;;  %1097 = vmatpush3.msra.mxu0 %v423_v16  ;;  %v540_v22 = vld [vmem:[%s1369_s27 + $0x78] sm:$0xff]  ;;  %v421_v23 = vld [vmem:[%s1364_s23 + $0x68] sm:$0xff]  ;;  %v436_v24 = vld [vmem:[%s1364_s23 + $0xe0] sm:$0xff] }
  0x1f   : > { %596 = vmatpush1.msra.mxu1 %v549_v8  ;;  %1098 = vmatprep.subr.mxu0 %v438_v18  ;;  %v539_v25 = vld [vmem:[%s1369_s27 + $0x70] sm:$0xff]  ;;  %v420_v26 = vld [vmem:[%s1364_s23 + $0x60] sm:$0xff]  ;;  %v538_v27 = vld [vmem:[%s1369_s27 + $0x68] sm:$0xff] }
  0x20   : > { %597 = vmatprep.subr.mxu1 %v548_v9  ;;  %1099 = vmatpush3.msra.mxu0 %v422_v19  ;;  %v435_v28 = vld [vmem:[%s1364_s23 + $0xd8] sm:$0xff]  ;;  %v537_v29 = vld [vmem:[%s1369_s27 + $0x60] sm:$0xff]  ;;  %v434_v32 = vld [vmem:[%s1364_s23 + $0xd0] sm:$0xff] }
  0x21   : > { %598 = vmatpush1.msra.mxu1 %v547_v10  ;;  %1100 = vmatprep.subr.mxu0 %v437_v21  ;;  %v419_v30 = vld [vmem:[%s1364_s23 + $0x58] sm:$0xff]  ;;  %v535_v33 = vld [vmem:[%s1369_s27 + $0x50] sm:$0xff]  ;;  %v534_v35 = vld [vmem:[%s1369_s27 + $0x48] sm:$0xff] }
  0x22   : > { %599 = vmatprep.subr.mxu1 %v546_v11  ;;  %1101 = vmatpush3.msra.mxu0 %v421_v23  ;;  %v536_v31 = vld [vmem:[%s1369_s27 + $0x58] sm:$0xff]  ;;  %v418_v34 = vld [vmem:[%s1364_s23 + $0x50] sm:$0xff]  ;;  %v433_v36 = vld [vmem:[%s1364_s23 + $0xc8] sm:$0xff] }
  0x23   : > { %600 = vmatpush1.msra.mxu1 %v545_v12  ;;  %1102 = vmatprep.subr.mxu0 %v436_v24  ;;  %v533_v37 = vld [vmem:[%s1369_s27 + $0x40] sm:$0xff]  ;;  %v417_v38 = vld [vmem:[%s1364_s23 + $0x48] sm:$0xff]  ;;  %v532_v39 = vld [vmem:[%s1369_s27 + $0x38] sm:$0xff] }
  0x24   : > { %601 = vmatprep.subr.mxu1 %v544_v13  ;;  %1103 = vmatpush3.msra.mxu0 %v420_v26  ;;  %v432_v40 = vld [vmem:[%s1364_s23 + $0xc0] sm:$0xff]  ;;  %v531_v41 = vld [vmem:[%s1369_s27 + $0x30] sm:$0xff]  ;;  %v530_v43 = vld [vmem:[%s1369_s27 + $0x28] sm:$0xff] }
  0x25   : > { %602 = vmatpush1.msra.mxu1 %v543_v15  ;;  %1104 = vmatprep.subr.mxu0 %v435_v28  ;;  %v416_v42 = vld [vmem:[%s1364_s23 + $0x40] sm:$0xff]  ;;  %v431_v44 = vld [vmem:[%s1364_s23 + $0xb8] sm:$0xff]  ;;  %v430_v48 = vld [vmem:[%s1364_s23 + $0xb0] sm:$0xff] }
  0x26   : > { %603 = vmatprep.subr.mxu1 %v542_v17  ;;  %1105 = vmatpush3.msra.mxu0 %v419_v30  ;;  %v529_v45 = vld [vmem:[%s1369_s27 + $0x20] sm:$0xff]  ;;  %v415_v46 = vld [vmem:[%s1364_s23 + $0x38] sm:$0xff]  ;;  %v527_v49 = vld [vmem:[%s1369_s27 + $0x10] sm:$0xff] }
  0x27   : > { %604 = vmatpush1.msra.mxu1 %v541_v20  ;;  %1106 = vmatprep.subr.mxu0 %v434_v32  ;;  %v528_v47 = vld [vmem:[%s1369_s27 + $0x18] sm:$0xff]  ;;  %v414_v50 = vld [vmem:[%s1364_s23 + $0x30] sm:$0xff]  ;;  %v526_v51 = vld [vmem:[%s1369_s27 + $0x8] sm:$0xff] }
  0x28   : > { %605 = vmatprep.subr.mxu1 %v540_v22  ;;  %1107 = vmatpush3.msra.mxu0 %v418_v34  ;;  %v429_v52 = vld [vmem:[%s1364_s23 + $0xa8] sm:$0xff]  ;;  %v525_v53 = vld [vmem:[%s1369_s27] sm:$0xff]  ;;  %v588_v55 = vld [vmem:[%s1369_s27 + $0x1f8] sm:$0xff] }
  0x29   : > { %606 = vmatpush1.msra.mxu1 %v539_v25  ;;  %1108 = vmatprep.subr.mxu0 %v433_v36  ;;  %v413_v54 = vld [vmem:[%s1364_s23 + $0x28] sm:$0xff]  ;;  %v428_v56 = vld [vmem:[%s1364_s23 + $0xa0] sm:$0xff]  ;;  %v587_v57 = vld [vmem:[%s1369_s27 + $0x1f0] sm:$0xff] }
  0x2a   : > { %607 = vmatprep.subr.mxu1 %v538_v27  ;;  %1109 = vmatpush3.msra.mxu0 %v417_v38  ;;  %v412_v58 = vld [vmem:[%s1364_s23 + $0x20] sm:$0xff]  ;;  %v586_v59 = vld [vmem:[%s1369_s27 + $0x1e8] sm:$0xff]  ;;  %v427_v60 = vld [vmem:[%s1364_s23 + $0x98] sm:$0xff] }
  0x2b   : > { %608 = vmatpush1.msra.mxu1 %v537_v29  ;;  %1110 = vmatprep.subr.mxu0 %v432_v40  ;;  %v585_v61 = vld [vmem:[%s1369_s27 + $0x1e0] sm:$0xff]  ;;  %v411_v62 = vld [vmem:[%s1364_s23 + $0x18] sm:$0xff]  ;;  %v426_v0 = vld [vmem:[%s1364_s23 + $0x90] sm:$0xff]  ;;  %v1274_v40 = vmov 1983009808  }
  0x2c   : > { %609 = vmatprep.subr.mxu1 %v536_v31  ;;  %1111 = vmatpush3.msra.mxu0 %v416_v42  ;;  %v584_v63 = vld [vmem:[%s1369_s27 + $0x1d8] sm:$0xff]  ;;  %v583_v1 = vld [vmem:[%s1369_s27 + $0x1d0] sm:$0xff]  ;;  %v582_v3 = vld [vmem:[%s1369_s27 + $0x1c8] sm:$0xff]  ;;  %v666_v42 = vlaneseq }
  0x2d   : > { %610 = vmatpush1.msra.mxu1 %v535_v33  ;;  %1112 = vmatprep.subr.mxu0 %v431_v44  ;;  %v410_v2 = vld [vmem:[%s1364_s23 + $0x10] sm:$0xff]  ;;  %v425_v4 = vld [vmem:[%s1364_s23 + $0x88] sm:$0xff]  ;;  %v1441_v5 = vld.sshfl [vmem:[%s1359_s19] sm:$0x33 pattern:$0x76325410] }
  0x2e   : > { %611 = vmatprep.subr.mxu1 %v534_v35  ;;  %1113 = vmatpush3.msra.mxu0 %v415_v46  ;;  %v581_v6 = vld [vmem:[%s1369_s27 + $0x1c0] sm:$0xff]  ;;  %v409_v7 = vld [vmem:[%s1364_s23 + $0x8] sm:$0xff]  ;;  %v580_v8 = vld [vmem:[%s1369_s27 + $0x1b8] sm:$0xff]  ;;  %v448_v12 = vcombine.high %v1441_v5, %v1441_v5  ;;  %v667_v44 = vshrl.u32 %v666_v42, 7 }
  0x2f   : > { %612 = vmatpush1.msra.mxu1 %v533_v37  ;;  %1114 = vmatprep.subr.mxu0 %v430_v48  ;;  %v424_v9 = vld [vmem:[%s1364_s23 + $0x80] sm:$0xff]  ;;  %v579_v10 = vld [vmem:[%s1369_s27 + $0x1b0] sm:$0xff]  ;;  %v578_v13 = vld [vmem:[%s1369_s27 + $0x1a8] sm:$0xff] }
  0x30   : > { %613 = vmatprep.subr.mxu1 %v532_v39  ;;  %1115 = vmatpush3.msra.mxu0 %v414_v50  ;;  %v408_v11 = vld [vmem:[%s1364_s23] sm:$0xff]  ;;  %v576_v15 = vld [vmem:[%s1369_s27 + $0x198] sm:$0xff]  ;;  %v575_v16 = vld [vmem:[%s1369_s27 + $0x190] sm:$0xff] }
  0x31   : > { %614 = vmatpush1.msra.mxu1 %v531_v41  ;;  %1116 = vmatprep.subr.mxu0 %v429_v52  ;;  %v577_v14 = vld [vmem:[%s1369_s27 + $0x1a0] sm:$0xff]  ;;  %v574_v17 = vld [vmem:[%s1369_s27 + $0x188] sm:$0xff]  ;;  %v572_v19 = vld [vmem:[%s1369_s27 + $0x178] sm:$0xff]  ;;  %v664_v41 = vunpack.c.l.s4 %v1274_v40 }
  0x32   : > { %615 = vmatprep.subr.mxu1 %v530_v43  ;;  %1117 = vmatpush3.msra.mxu0 %v413_v54  ;;  %v573_v18 = vld [vmem:[%s1369_s27 + $0x180] sm:$0xff]  ;;  %v571_v20 = vld [vmem:[%s1369_s27 + $0x170] sm:$0xff]  ;;  %v570_v21 = vld [vmem:[%s1369_s27 + $0x168] sm:$0xff] }
  0x33   : > { %616 = vmatpush1.msra.mxu1 %v529_v45  ;;  %1118 = vmatprep.subr.mxu0 %v428_v56  ;;  %v569_v22 = vld [vmem:[%s1369_s27 + $0x160] sm:$0xff]  ;;  %v568_v23 = vld [vmem:[%s1369_s27 + $0x158] sm:$0xff]  ;;  %v567_v24 = vld [vmem:[%s1369_s27 + $0x150] sm:$0xff]  ;;  %v665_v43 = vunpack.c.0.s8 %v664_v41 }
  0x34   : > { %617 = vmatprep.subr.mxu1 %v528_v47  ;;  %1119 = vmatpush3.msra.mxu0 %v412_v58  ;;  %v566_v25 = vld [vmem:[%s1369_s27 + $0x148] sm:$0xff]  ;;  %v565_v26 = vld [vmem:[%s1369_s27 + $0x140] sm:$0xff]  ;;  %v564_v27 = vld [vmem:[%s1369_s27 + $0x138] sm:$0xff] }
  0x35   : > { %618 = vmatpush1.msra.mxu1 %v527_v49  ;;  %1120 = vmatprep.subr.mxu0 %v427_v60  ;;  %v563_v28 = vld [vmem:[%s1369_s27 + $0x130] sm:$0xff]  ;;  %v562_v29 = vld [vmem:[%s1369_s27 + $0x128] sm:$0xff]  ;;  %v561_v30 = vld [vmem:[%s1369_s27 + $0x120] sm:$0xff]  ;;  %v1476_v46 = vsub.s32 %v665_v43, %v667_v44 }
  0x36   : > { %619 = vmatprep.subr.mxu1 %v526_v51  ;;  %1121 = vmatpush3.msra.mxu0 %v411_v62  ;;  %v560_v31 = vld [vmem:[%s1369_s27 + $0x118] sm:$0xff]  ;;  %v559_v32 = vld [vmem:[%s1369_s27 + $0x110] sm:$0xff]  ;;  %v558_v33 = vld [vmem:[%s1369_s27 + $0x108] sm:$0xff] }
  0x37   : > { %620 = vmatpush1.msra.mxu1 %v525_v53  ;;  %1122 = vmatprep.subr.mxu0 %v426_v0  ;;  %v557_v34 = vld [vmem:[%s1369_s27 + $0x100] sm:$0xff] }
  0x38   : > { %621 = vmatprep.subr.mxu1 %v588_v55  ;;  %1123 = vmatpush3.msra.mxu0 %v410_v2  ;;  %v407_v36 = vld [vmem:[#allocation2] sm:$0x3]  ;;  %v524_v49 = vld [vmem:[#allocation3] sm:$0xf] }
  0x39   : > { %622 = vmatpush2.msra.mxu1 %v587_v57  ;;  %1124 = vmatprep.subr.mxu0 %v425_v4 }
  0x3a   : > { %623 = vmatprep.subr.mxu1 %v586_v59  ;;  %1125 = vmatpush3.msra.mxu0 %v409_v7 }
  0x3b   : > { %624 = vmatpush2.msra.mxu1 %v585_v61  ;;  %1126 = vmatprep.subr.mxu0 %v424_v9 }
  0x3c   : > { %625 = vmatprep.subr.mxu1 %v584_v63  ;;  %1127 = vmatpush3.msra.mxu0 %v408_v11 }
  0x3d   : > { %626 = vmatpush2.msra.mxu1 %v583_v1  ;;  %515 = vmatprep.mubr.f32.mxu0 %v448_v12 }
  0x3e   : > { %627 = vmatprep.subr.mxu1 %v582_v3  ;;  %653 = vmatprep.mubr.f32.mxu1 %v448_v12 }
  0x3f   : > { %628 = vmatpush2.msra.mxu1 %v581_v6  ;;  %516 = vmatmul.mubr.f32.vlgmr.msra.gmra.mxu0 %v1441_v5 }
  0x40   : > { %629 = vmatprep.subr.mxu1 %v580_v8 }
  0x41   : > { %630 = vmatpush2.msra.mxu1 %v579_v10 }
  0x42   : > { %631 = vmatprep.subr.mxu1 %v578_v13 }
  0x43   : > { %632 = vmatpush2.msra.mxu1 %v577_v14 }
  0x44   : > { %633 = vmatprep.subr.mxu1 %v576_v15 }
  0x45   : > { %634 = vmatpush2.msra.mxu1 %v575_v16 }
  0x46   : > { %635 = vmatprep.subr.mxu1 %v574_v17 }
  0x47   : > { %636 = vmatpush2.msra.mxu1 %v573_v18 }
  0x48   : > { %637 = vmatprep.subr.mxu1 %v572_v19 }
  0x49   : > { %638 = vmatpush2.msra.mxu1 %v571_v20 }
  0x4a   : > { %639 = vmatprep.subr.mxu1 %v570_v21 }
  0x4b   : > { %640 = vmatpush2.msra.mxu1 %v569_v22 }
  0x4c   : > { %641 = vmatprep.subr.mxu1 %v568_v23 }
  0x4d   : > { %642 = vmatpush2.msra.mxu1 %v567_v24 }
  0x4e   : > { %643 = vmatprep.subr.mxu1 %v566_v25 }
  0x4f   : > { %644 = vmatpush2.msra.mxu1 %v565_v26 }
  0x50   : > { %645 = vmatprep.subr.mxu1 %v564_v27 }
  0x51   : > { %646 = vmatpush2.msra.mxu1 %v563_v28 }
  0x52   : > { %647 = vmatprep.subr.mxu1 %v562_v29 }
  0x53   : > { %648 = vmatpush2.msra.mxu1 %v561_v30 }
  0x54   : > { %649 = vmatprep.subr.mxu1 %v560_v31 }
  0x55   : > { %650 = vmatpush2.msra.mxu1 %v559_v32 }
  0x56   : > { %651 = vmatprep.subr.mxu1 %v558_v33 }
  0x57   : > { %652 = vmatpush2.msra.mxu1 %v557_v34 }
  0x58   : > { %654 = vmatmul.mubr.f32.vlgmr.msra.gmra.mxu1 %v1441_v5 }
  0xff   : > { %v1128_v35 = vpop.f32.mrf.mxu0 }
 0x101   : > { %v1129_v37 = vpop.f32.mrf.mxu0 }
 0x102   : > { %v1130_v38 = vadd.f32 %v1129_v37, %v1128_v35 }
 0x104   : > { %v521_v39 = vadd.f32 %v1130_v38, %v407_v36 }
 0x106   : > { %523 = vst.msk [vmem:[#allocation2] sm:$0x3] %vm522_vm1, %v521_v39 }
 0x118   : > { %v655_v45 = vpop.f32.mrf.mxu1 }
 0x11a   : > { %v657_v47 = vpop.f32.mrf.mxu1 }
 0x11b   : > { %v662_v48 = vcombine.low %v655_v45, %v657_v47 }
 0x11d   : > { %v669_v50 = vrot.slane %v662_v48, %v1476_v46  ;;  %676 = sbr.rel (%p1083_p7) target bundleno = 904 (0x388), region = 64 }
 0x11f   : > { %v671_v51 = vadd.f32 %v669_v50, %v524_v49 }
 0x121   : > { %672 = vst [vmem:[#allocation3] sm:$0xf] %v671_v51 }
 0x122   : > { %v693_v52 = vld [vmem:[%s1557_s4 + $0x38] sm:$0xff]  ;;  %v1275_v53 = vmov 0.0   ;;  %v692_v54 = vld [vmem:[%s1557_s4 + $0x30] sm:$0xff]  ;;  %vm1276_vm2 = vmmov 0   ;;  %v691_v55 = vld [vmem:[%s1557_s4 + $0x28] sm:$0xff]  ;;  %vm701_vm3 = vcmask 523264  }
 0x123   : > { %1145 = vmatprep.subr.mxu0 %v1275_v53  ;;  %1161 = vmatprep.mubr.msk.f32.mxu0 %vm1276_vm2, %v1275_v53  ;;  %v690_v56 = vld [vmem:[%s1557_s4 + $0x20] sm:$0xff]  ;;  %v689_v57 = vld [vmem:[%s1557_s4 + $0x18] sm:$0xff]  ;;  %v688_v58 = vld [vmem:[%s1557_s4 + $0x10] sm:$0xff]  ;;  %vm785_vm4 = vcmask 130048   ;;  %vm864_vm5 = vcmask 1043456   ;;  %v1277_v8 = vmov 2  }
 0x124   : > { %1146 = vmatpush3.msra.mxu0 %v693_v52  ;;  %1164 = vmatprep.subr.mxu1 %v1275_v53  ;;  %v677_v59 = vld [vmem:[#allocation2] sm:$0x3]  ;;  %v687_v61 = vld [vmem:[%s1557_s4 + $0x8] sm:$0xff]  ;;  %v1278_v9 = vmov 0   ;;  %vm860_vm6 = vcmask 31744   ;;  %v1279_v16 = vmov 3  }
 0x125   : > { %1147 = vmatprep.subr.mxu0 %v1275_v53  ;;  %1168 = vmatprep.mubr.msk.f32.mxu1 %vm1276_vm2, %v1275_v53  ;;  %v1084_v60 = vld [vmem:[%s1556_s3] ss:$0 sm:$0xff]  ;;  %v777_v0 = vld [vmem:[%s1559_s6 + $0x8] sm:$0xff]  ;;  %v1280_v17 = vmov 1  }
 0x126   : > { %1148 = vmatpush3.msra.mxu0 %v692_v54  ;;  %v686_v62 = vld [vmem:[%s1557_s4] sm:$0xff]  ;;  %v685_v63 = vadd.f32 %v1084_v60, %v677_v59  ;;  %1165 = vmatpush3.msra.mxu1 %v777_v0 }
 0x127   : > { %1149 = vmatprep.subr.mxu0 %v1275_v53  ;;  %1166 = vmatprep.subr.mxu1 %v1275_v53  ;;  %v776_v1 = vld [vmem:[%s1559_s6] sm:$0xff] }
 0x128   : > { %1150 = vmatpush3.msra.mxu0 %v691_v55  ;;  %1167 = vmatpush3.msra.mxu1 %v776_v1  ;;  %v1085_v2 = vld [vmem:[%s1558_s5] ss:$0 sm:$0xff]  ;;  %v939_v13 = vld [vmem:[#allocation3] sm:$0xf] }
 0x129   : > { %1151 = vmatprep.subr.mxu0 %v1275_v53  ;;  %1171 = vmatprep.subr.mxu1 %v1275_v53  ;;  %v859_v7 = vld [vmem:[%s1561_s8] sm:$0xf]  ;;  %v957_v15 = vrot.slane %v939_v13, %v1476_v46 }
 0x12a   : > { %1152 = vmatpush3.msra.mxu0 %v690_v56  ;;  %1218 = vset.pattern.permute.xlu1 %v1277_v8  ;;  %v1087_v10 = vld [vmem:[%s1560_s7] ss:$0 sm:$0xff] }
 0x12b   : > { %1153 = vmatprep.subr.mxu0 %v1275_v53  ;;  %1216 = vset.pattern.permute.xlu0 %v1278_v9  ;;  %v967_v18 = vcombine.high %v957_v15, %v957_v15 }
 0x12c   : > { %1154 = vmatpush3.msra.mxu0 %v689_v57 }
 0x12d   : > { %1155 = vmatprep.subr.mxu0 %v1275_v53 }
 0x12e   : > { %1156 = vmatpush3.msra.mxu0 %v688_v58 }
 0x12f   : > { %1157 = vmatprep.subr.mxu0 %v1275_v53 }
 0x130   : > { %1158 = vmatpush3.msra.mxu0 %v687_v61 }
 0x131   : > { %1159 = vmatprep.subr.mxu0 %v1275_v53 }
 0x132   : > { %1160 = vmatpush3.msra.mxu0 %v686_v62 }
 0x133   : > { %1162 = vmatmul.mubr.msk.f32.vlgmr.msra.gmra.mxu0 %vm701_vm3, %v685_v63 }
 0x1f3   : > { %v771_v3 = vpop.f32.mrf.mxu0 }
 0x1f4   : > { %v772_v4 = vadd.f32 %v1085_v2, %v771_v3 }
 0x1f5   : > { %v1163_v5 = vpop.f32.mrf.mxu0 }
 0x1f6   : > { %v775_v6 = vmax.f32 %v772_v4, 0.0 }
 0x1f8   : > { %1169 = vmatmul.mubr.msk.f32.vlgmr.msra.gmra.mxu1 %vm785_vm4, %v775_v6 }
 0x1f9   : > { %1172 = vmatpush3.msk.msra.mxu1 %vm864_vm5, %v859_v7  ;;  %1173 = vmatprep.mubr.msk.f32.mxu1 %vm1276_vm2, %v1275_v53 }
 0x2b8   : > { %v855_v11 = vpop.f32.mrf.mxu1 }
 0x2b9   : > { %v856_v12 = vadd.f32 %v1087_v10, %v855_v11 }
 0x2ba   : > { %v1170_v14 = vpop.f32.mrf.mxu1 }
 0x2bb   : > { %964 = vperm.xlu1 %1218, %v856_v12   ;;  %941 = vperm.xlu0 %1216, %v856_v12  }
 0x2bc   : > { %1174 = vmatmul.mubr.msk.f32.vlgmr.msra.gmra.mxu1 %vm860_vm6, %v856_v12 }
 0x2bf   : > { %1219 = vset.pattern.permute.xlu1 %v1279_v16  ;;  %1217 = vset.pattern.permute.xlu0 %v1280_v17 }
 0x2c0   : > { %972 = vperm.xlu1 %1219, %v856_v12   ;;  %947 = vperm.xlu0 %1217, %v856_v12  }
 0x2c4   : > { %958 = vrot.lane.b32.xlu1 %v957_v15, %s1281_s22  ;;  %975 = vrot.lane.b32.xlu0 %v967_v18, %s1281_s22 }
 0x2c5   : > { %1220 = vset.pattern.permute.xlu0 %v1279_v16 }
 0x336   : > { %v965_v19 = vpop.permute.xlu1 %964  ;;  %v942_v20 = vpop.permute.xlu0 %941 }
 0x337   : > { %v944_v25 = vmul.f32 %v942_v20, %v939_v13  ;;  %v969_v31 = vmul.f32 %v967_v18, %v965_v19 }
 0x33b   : > { %v973_v21 = vpop.permute.xlu1 %972  ;;  %v948_v22 = vpop.permute.xlu0 %947 }
 0x33f   : > { %v959_v23 = vpop.permute.xlu1 %958  ;;  %v976_v30 = vpop.permute.xlu0 %975 }
 0x340   : > { %v961_v28 = vmul.f32 %v959_v23, %v948_v22  ;;  %v978_v33 = vmul.f32 %v976_v30, %v973_v21 }
 0x37c   : > { %v934_v24 = vpop.f32.mrf.mxu1 }
 0x37d   : > { %v938_v26 = vadd.f32 %v934_v24, %v685_v63 }
 0x37e   : > { %v1175_v27 = vpop.f32.mrf.mxu1 }
 0x37f   : > { %v945_v29 = vadd.f32 %v944_v25, %v938_v26 }
 0x381   : > { %v962_v32 = vadd.f32 %v961_v28, %v945_v29 }
 0x383   : > { %v970_v34 = vadd.f32 %v969_v31, %v962_v32 }
 0x385   : > { %v979_v35 = vadd.f32 %v978_v33, %v970_v34 }
 0x387   : > { %980 = vst.msk [vmem:[#allocation4] sm:$0x3] %vm522_vm1, %v979_v35 }
 0x388 PF: > { %p1529_p8 = scmp.eq.s32.totalorder %s1070_s12, 2  ;;  %s1282_s24 = smov [#allocation4]  }
 0x389   : > { %s990_s25 = sshll.u32 %s1282_s24, 4  ;;  %s991_s25 = int_to_ptr.vmem [resolvable:$true] %s990_s25 }
 0x38a   : > { %s1221_s26 = scalar_lea.vmem %s991_s25, 32  ;;  %p1228_p12 = scmp.lt.s32.totalorder %s991_s25, %s991_s25 }
 0x38b   : > { %p1222_p9 = scmp.ne.s32.totalorder %s991_s25, %s1221_s26  ;;  %p1229_p13 = scmp.lt.s32.totalorder %s1221_s26, %s1221_s26 }
 0x38d   : > { %p1223_p10 = pnand %p1222_p9, %p1529_p8  ;;  %p1230_p0 = por %p1229_p13, %p1228_p12 }
 0x38f   : > { %p1224_p11 = pneg %p1223_p10 }
 0x391   : > { %p1231_p1 = pnand %p1230_p0, %p1224_p11 }
 0x393   : > { %1234 = shalt.err (!%p1231_p1)
}
 0x394   : > { %1177 = dma.vmem_to_hbm [thread:$0]  (%p1529_p8), %s991_s25, 32, %s1562_s9, [#allocation5]  }
 0x395   : > { %1258 = dma.done.wait (%p1529_p8), [#allocation5], 32  }
 0x396   : > { %1260 = vsyncadd (%p1529_p8), [#allocation5], 4294967264 }
 0x397 PF: > { %s20_s11 = sadd.s32 1, %s1271_s11   ;;  %s1564_s30 = smov %s1267_s10 }
 0x398   : > { %p17_p2 = scmp.ge.s32.totalorder %s20_s11, 5   ;;  %s1565_s10 = smov %s1567_s13 }
 0x39a   :  { %19 = sbr.rel (!%p17_p2) target bundleno = 2 (0x2), region = 98 }
 0x39f   :  { %1003 = vsyncpa [#allocation5], 1 }
 0x3a0   :  { %1005 = vsyncpa [#allocation5 + $0x1], 1 }

</bundles_post_ra>
